<compile_context>
chip_gen: v6e
topology: v6e:2x2x1
jax: 0.10.0
libtpu: 0.0.40
codegen_flags: <defaults>
</compile_context>

<pallas_src>
import jax
import jax.numpy as jnp
import numpy as np
from jax.experimental import pallas as pl
from jax.experimental.pallas import tpu as pltpu


def ahbf_kernel(x_ref, y_ref, wx_ref, wy_ref, s1_ref, t1_ref,
                fw_ref, fb_ref,
                feasc_ref, gates_ref, acc_ref):
    h = pl.program_id(1)

    @pl.when(h == 0)
    def _zero():
        acc_ref[...] = jnp.zeros_like(acc_ref)

    # ---- 1x1 conv over the implicit [x; y] channel concat, as two
    #      block-diagonal matmuls over Bt packed batch rows ----
    conv = jnp.dot(wx_ref[...], x_ref[...], preferred_element_type=jnp.float32)
    conv = conv + jnp.dot(wy_ref[...], y_ref[...], preferred_element_type=jnp.float32)

    # ---- BN1 (eval mode), conv bias folded into the shift t1 ----
    feasc = conv * s1_ref[...] + t1_ref[...]                    # (Bt*C, HW_TILE)
    feasc_ref[...] = feasc.astype(feasc_ref.dtype)

    # ---- accumulate spatial sum across HW tiles (VPU add, no MXU pass) ----
    acc_ref[...] += feasc

    @pl.when(h == pl.num_programs(1) - 1)
    def _finalize():
        # GAP -> Linear(C,2) -> BN1d(2) -> ReLU -> softmax per batch row.
        # 1/HW, FC bias and BN_v1 affine are folded into fw/fb.
        g = jnp.dot(fw_ref[...], acc_ref[...],
                    preferred_element_type=jnp.float32)         # (2*Bt, HW_TILE)
        z = jnp.sum(g, axis=-1, keepdims=True) + fb_ref[...]    # (2*Bt, 1)
        z = jnp.maximum(z, 0.0)
        bt = gates_ref.shape[1] // 2
        for j in range(bt):                                     # tiny static unroll
            zj = z[2 * j:2 * j + 2, :]                          # (2, 1)
            zj = zj - jnp.max(zj, axis=0, keepdims=True)
            ej = jnp.exp(zj)
            wj = ej * pl.reciprocal(jnp.sum(ej, axis=0, keepdims=True))
            gates_ref[0, 2 * j:2 * j + 2, :] = wj.astype(gates_ref.dtype)


def _pick_bt(B, C):
    """Smallest divisor of B such that bt*C fills the 8 f32 sublanes."""
    for bt in range(1, B + 1):
        if B % bt == 0 and (bt * C) % 8 == 0:
            return bt
    return 1


def _pick_hw_tile(HW, rows, itemsize, budget_bytes=24 << 20):
    """Largest multiple of 128 dividing HW s.t. the pipelined tiles fit VMEM."""
    if HW % 128 != 0:
        return HW  # full spatial extent (block dim equals the full array dim)
    best = 128
    t = 128
    while t <= HW:
        # x + y + feasc double-buffered (6 tiles) + the accumulator slab.
        if HW % t == 0 and 7 * rows * t * itemsize <= budget_bytes:
            best = t
        t += 128
    return best


def ahbf_forward(x, y, logitx, logity, params, eps=1e-5, bt=None, hw_tile=None):
    """x, y: (B, C, H, W) NCHW; logitx, logity: (B, N). Returns (feasc NCHW, logit)."""
    B, C, H, W = x.shape
    HW = H * W
    dtype = x.dtype
    itemsize = jnp.dtype(dtype).itemsize

    if bt is None:
        bt = _pick_bt(B, C)
    assert B % bt == 0
    btc = bt * C
    if hw_tile is None:
        hw_tile = _pick_hw_tile(HW, btc, itemsize)
    assert HW % hw_tile == 0
    nb = B // bt
    n_hw = HW // hw_tile

    # Free reshapes only: (B, C, H, W) -> (B*C, HW). Bt batch rows per block.
    xf = x.reshape(B * C, HW)
    yf = y.reshape(B * C, HW)

    # ---- fold parameters into kernel-friendly, block-diagonal forms ----
    w = params["conv_w"].reshape(C, 2 * C).astype(jnp.float32)
    s1v = params["bn1_gamma"] / jnp.sqrt(params["bn1_var"] + eps)
    t1v = (params["conv_b"] - params["bn1_mean"]) * s1v + params["bn1_beta"]

    eye = jnp.eye(bt, dtype=jnp.float32)
    wx_bd = jnp.kron(eye, w[:, :C])                       # (bt*C, bt*C)
    wy_bd = jnp.kron(eye, w[:, C:])                       # (bt*C, bt*C)
    s1 = jnp.tile(s1v, bt).reshape(btc, 1)
    t1 = jnp.tile(t1v, bt).reshape(btc, 1)

    # Fold GAP 1/HW, FC bias and eval-mode BN_v1 into the FC weights.
    s2v = params["bnv1_gamma"] / jnp.sqrt(params["bnv1_var"] + eps)
    fw_f = (params["fc_w"] * s2v[:, None]) / HW           # (2, C)
    fb_f = (params["fc_b"] - params["bnv1_mean"]) * s2v + params["bnv1_beta"]
    fw_all = jnp.kron(eye, fw_f)                          # (2*bt, bt*C)
    fb_all = jnp.tile(fb_f, bt).reshape(2 * bt, 1)

    tile_bytes = btc * hw_tile * itemsize
    vmem_limit = int(min(max(10 * tile_bytes + (2 << 20), 16 << 20), 48 << 20))

    feasc_flat, gates = pl.pallas_call(
        ahbf_kernel,
        out_shape=(jax.ShapeDtypeStruct((B * C, HW), dtype),
                   jax.ShapeDtypeStruct((nb, 2 * bt, 1), jnp.float32)),
        grid_spec=pltpu.PrefetchScalarGridSpec(
            num_scalar_prefetch=0,
            grid=(nb, n_hw),
            in_specs=[
                pl.BlockSpec((btc, hw_tile), lambda b, h: (b, h)),      # x
                pl.BlockSpec((btc, hw_tile), lambda b, h: (b, h)),      # y
                pl.BlockSpec((btc, btc), lambda b, h: (0, 0)),          # conv W (x half)
                pl.BlockSpec((btc, btc), lambda b, h: (0, 0)),          # conv W (y half)
                pl.BlockSpec((btc, 1), lambda b, h: (0, 0)),            # bn1 scale
                pl.BlockSpec((btc, 1), lambda b, h: (0, 0)),            # bn1 shift (+bias)
                pl.BlockSpec((2 * bt, btc), lambda b, h: (0, 0)),       # fc weight (folded)
                pl.BlockSpec((2 * bt, 1), lambda b, h: (0, 0)),         # fc bias (folded)
            ],
            out_specs=[
                pl.BlockSpec((btc, hw_tile), lambda b, h: (b, h)),      # feasc
                pl.BlockSpec((1, 2 * bt, 1), lambda b, h: (b, 0, 0)),   # softmax gates
            ],
            scratch_shapes=[pltpu.VMEM((btc, hw_tile), jnp.float32)],
        ),
        compiler_params=pltpu.CompilerParams(
            dimension_semantics=("parallel", "arbitrary"),
            vmem_limit_bytes=vmem_limit),
    )(xf, yf, wx_bd, wy_bd, s1, t1, fw_all, fb_all)

    feasc = feasc_flat.reshape(B, C, H, W)
    gates = gates.reshape(B, 2).astype(dtype)
    # Trivial gated combination (B*N*2 FLOPs) kept in XLA, per the review.
    logit = gates[:, 0:1] * logitx + gates[:, 1:2] * logity
    return feasc, logit


def ahbf_reference(x, y, logitx, logity, params, eps=1e-5):
    """Pure-JAX reference matching the PyTorch forward (eval-mode BN)."""
    xy = jnp.concatenate([x, y], axis=1)
    B, C2, H, W = xy.shape
    C = C2 // 2
    w = params["conv_w"].reshape(C, C2)
    conv = jnp.einsum("oc,bchw->bohw", w, xy) + params["conv_b"][None, :, None, None]
    s1 = params["bn1_gamma"] / jnp.sqrt(params["bn1_var"] + eps)
    feasc = (conv - params["bn1_mean"][None, :, None, None]) * s1[None, :, None, None] \
            + params["bn1_beta"][None, :, None, None]
    pooled = jnp.mean(feasc, axis=(2, 3))
    z = pooled @ params["fc_w"].T + params["fc_b"]
    s2 = params["bnv1_gamma"] / jnp.sqrt(params["bnv1_var"] + eps)
    z = (z - params["bnv1_mean"]) * s2 + params["bnv1_beta"]
    z = jnp.maximum(z, 0.0)
    wsm = jax.nn.softmax(z, axis=1)
    logit = wsm[:, 0:1] * logitx + wsm[:, 1:2] * logity
    return feasc, logit


if __name__ == "__main__":
    key = jax.random.PRNGKey(0)
    B, C, H, W, N = 2, 4, 16, 16, 8   # inchannel=4, logits with 8 classes
    ks = jax.random.split(key, 16)

    x = jax.random.normal(ks[0], (B, C, H, W), jnp.float32)
    y = jax.random.normal(ks[1], (B, C, H, W), jnp.float32)
    logitx = jax.random.normal(ks[2], (B, N), jnp.float32)
    logity = jax.random.normal(ks[3], (B, N), jnp.float32)

    # Deterministic synthetic parameters (conv1, bn1, control_v1, bn_v1).
    params = {
        "conv_w": 0.1 * jax.random.normal(ks[4], (C, 2 * C, 1, 1), jnp.float32),
        "conv_b": 0.1 * jax.random.normal(ks[5], (C,), jnp.float32),
        "bn1_gamma": 1.0 + 0.1 * jax.random.normal(ks[6], (C,), jnp.float32),
        "bn1_beta": 0.1 * jax.random.normal(ks[7], (C,), jnp.float32),
        "bn1_mean": 0.1 * jax.random.normal(ks[8], (C,), jnp.float32),
        "bn1_var": jnp.abs(jax.random.normal(ks[9], (C,), jnp.float32)) + 0.5,
        "fc_w": 0.5 * jax.random.normal(ks[10], (2, C), jnp.float32),
        "fc_b": 0.1 * jax.random.normal(ks[11], (2,), jnp.float32),
        "bnv1_gamma": 1.0 + 0.1 * jax.random.normal(ks[12], (2,), jnp.float32),
        "bnv1_beta": 0.1 * jax.random.normal(ks[13], (2,), jnp.float32),
        "bnv1_mean": 0.1 * jax.random.normal(ks[14], (2,), jnp.float32),
        "bnv1_var": jnp.abs(jax.random.normal(ks[15], (2,), jnp.float32)) + 0.5,
    }

    # hw_tile=128 -> 2 HW steps per batch block: exercises the accumulator
    # init / accumulate / finalize path as well as the pipelined stores.
    feasc, logit = ahbf_forward(x, y, logitx, logity, params, hw_tile=128)
    jax.block_until_ready((feasc, logit))

    feasc_ref, logit_ref = ahbf_reference(x, y, logitx, logity, params)
    np.testing.assert_allclose(np.asarray(feasc), np.asarray(feasc_ref),
                               rtol=1e-4, atol=1e-4)
    np.testing.assert_allclose(np.asarray(logit), np.asarray(logit_ref),
                               rtol=1e-4, atol=1e-4)
    print("KERNEL_OK")
</pallas_src>

<mosaic_0001>
module attributes {stable_mosaic.version = 11 : i64} {
  func.func @ahbf_kernel(%arg0: i32, %arg1: i32, %arg2: memref<8x128xf32, #tpu.memory_space<vmem>>, %arg3: memref<8x128xf32, #tpu.memory_space<vmem>>, %arg4: memref<8x8xf32, #tpu.memory_space<vmem>>, %arg5: memref<8x8xf32, #tpu.memory_space<vmem>>, %arg6: memref<8x1xf32, #tpu.memory_space<vmem>>, %arg7: memref<8x1xf32, #tpu.memory_space<vmem>>, %arg8: memref<4x8xf32, #tpu.memory_space<vmem>>, %arg9: memref<4x1xf32, #tpu.memory_space<vmem>>, %arg10: memref<8x128xf32, #tpu.memory_space<vmem>>, %arg11: memref<1x4x1xf32, #tpu.memory_space<vmem>>, %arg12: memref<8x128xf32, #tpu.memory_space<vmem>>) attributes {dimension_semantics = [#tpu.dimension_semantics<parallel>, #tpu.dimension_semantics<arbitrary>], iteration_bounds = array<i64: 1, 2>, scalar_prefetch = 0 : i64, scratch_operands = 1 : i64, tpu.core_type = #tpu.core_type<tc>, window_params = [{transform_indices = @transform_0, window_bounds = array<i64: 8, 128>}, {transform_indices = @transform_1, window_bounds = array<i64: 8, 128>}, {pipeline_mode = #tpu.pipeline_mode<synchronous>, transform_indices = @transform_2, window_bounds = array<i64: 8, 8>}, {pipeline_mode = #tpu.pipeline_mode<synchronous>, transform_indices = @transform_3, window_bounds = array<i64: 8, 8>}, {pipeline_mode = #tpu.pipeline_mode<synchronous>, transform_indices = @transform_4, window_bounds = array<i64: 8, 1>}, {pipeline_mode = #tpu.pipeline_mode<synchronous>, transform_indices = @transform_5, window_bounds = array<i64: 8, 1>}, {pipeline_mode = #tpu.pipeline_mode<synchronous>, transform_indices = @transform_6, window_bounds = array<i64: 4, 8>}, {pipeline_mode = #tpu.pipeline_mode<synchronous>, transform_indices = @transform_7, window_bounds = array<i64: 4, 1>}, {transform_indices = @transform_8, window_bounds = array<i64: 8, 128>}, {transform_indices = @transform_9, window_bounds = array<i64: 1, 4, 1>}]} {
    %c0_i32 = arith.constant 0 : i32
    %0 = arith.cmpi eq, %arg1, %c0_i32 : i32
    %1 = arith.extui %0 : i1 to i32
    %c0_i32_0 = arith.constant 0 : i32
    %2 = arith.cmpi ne, %1, %c0_i32_0 : i32
    scf.if %2 {
      %cst_20 = arith.constant 0.000000e+00 : f32
      %23 = vector.broadcast %cst_20 : f32 to vector<8x128xf32>
      %c0_21 = arith.constant 0 : index
      %c0_22 = arith.constant 0 : index
      %24 = vector.load %arg12[%c0_21, %c0_22] : memref<8x128xf32, #tpu.memory_space<vmem>>, vector<8x128xf32>
      tpu.vector_store %arg12[%c0_21, %c0_22], %23 {strides = array<i32>} : memref<8x128xf32, #tpu.memory_space<vmem>>, vector<8x128xf32>,
    } else {
    }
    %c0 = arith.constant 0 : index
    %c0_1 = arith.constant 0 : index
    %3 = vector.load %arg4[%c0, %c0_1] : memref<8x8xf32, #tpu.memory_space<vmem>>, vector<8x8xf32>
    %c0_2 = arith.constant 0 : index
    %c0_3 = arith.constant 0 : index
    %4 = vector.load %arg2[%c0_2, %c0_3] : memref<8x128xf32, #tpu.memory_space<vmem>>, vector<8x128xf32>
    %cst = arith.constant dense<0.000000e+00> : vector<8x128xf32>
    %5 = tpu.matmul %3, %4, %cst {dimension_numbers = #tpu.dot_dimension_numbers<[1], [0], [0], [1], [0, 0, 1, 1], [], []>} : vector<8x8xf32>, vector<8x128xf32>, vector<8x128xf32> -> vector<8x128xf32>
    %c0_4 = arith.constant 0 : index
    %c0_5 = arith.constant 0 : index
    %6 = vector.load %arg5[%c0_4, %c0_5] : memref<8x8xf32, #tpu.memory_space<vmem>>, vector<8x8xf32>
    %c0_6 = arith.constant 0 : index
    %c0_7 = arith.constant 0 : index
    %7 = vector.load %arg3[%c0_6, %c0_7] : memref<8x128xf32, #tpu.memory_space<vmem>>, vector<8x128xf32>
    %cst_8 = arith.constant dense<0.000000e+00> : vector<8x128xf32>
    %8 = tpu.matmul %6, %7, %cst_8 {dimension_numbers = #tpu.dot_dimension_numbers<[1], [0], [0], [1], [0, 0, 1, 1], [], []>} : vector<8x8xf32>, vector<8x128xf32>, vector<8x128xf32> -> vector<8x128xf32>
    %9 = arith.addf %5, %8 : vector<8x128xf32>
    %c0_9 = arith.constant 0 : index
    %c0_10 = arith.constant 0 : index
    %10 = vector.load %arg6[%c0_9, %c0_10] : memref<8x1xf32, #tpu.memory_space<vmem>>, vector<8x1xf32>
    %11 = vector.broadcast %10 : vector<8x1xf32> to vector<8x128xf32>
    %12 = arith.mulf %9, %11 : vector<8x128xf32>
    %c0_11 = arith.constant 0 : index
    %c0_12 = arith.constant 0 : index
    %13 = vector.load %arg7[%c0_11, %c0_12] : memref<8x1xf32, #tpu.memory_space<vmem>>, vector<8x1xf32>
    %14 = vector.broadcast %13 : vector<8x1xf32> to vector<8x128xf32>
    %15 = arith.addf %12, %14 : vector<8x128xf32>
    %c0_13 = arith.constant 0 : index
    %c0_14 = arith.constant 0 : index
    %16 = vector.load %arg10[%c0_13, %c0_14] : memref<8x128xf32, #tpu.memory_space<vmem>>, vector<8x128xf32>
    tpu.vector_store %arg10[%c0_13, %c0_14], %15 {strides = array<i32>} : memref<8x128xf32, #tpu.memory_space<vmem>>, vector<8x128xf32>,
    %c0_15 = arith.constant 0 : index
    %c0_16 = arith.constant 0 : index
    %17 = vector.load %arg12[%c0_15, %c0_16] : memref<8x128xf32, #tpu.memory_space<vmem>>, vector<8x128xf32>
    %18 = arith.addf %17, %15 : vector<8x128xf32>
    %c0_17 = arith.constant 0 : index
    %c0_18 = arith.constant 0 : index
    %19 = vector.load %arg12[%c0_17, %c0_18] : memref<8x128xf32, #tpu.memory_space<vmem>>, vector<8x128xf32>
    tpu.vector_store %arg12[%c0_17, %c0_18], %18 {strides = array<i32>} : memref<8x128xf32, #tpu.memory_space<vmem>>, vector<8x128xf32>,
    %c1_i32 = arith.constant 1 : i32
    %20 = arith.cmpi eq, %arg1, %c1_i32 : i32
    %21 = arith.extui %20 : i1 to i32
    %c0_i32_19 = arith.constant 0 : i32
    %22 = arith.cmpi ne, %21, %c0_i32_19 : i32
    scf.if %22 {
      %c0_20 = arith.constant 0 : index
      %c0_21 = arith.constant 0 : index
      %23 = vector.load %arg8[%c0_20, %c0_21] : memref<4x8xf32, #tpu.memory_space<vmem>>, vector<4x8xf32>
      %c0_22 = arith.constant 0 : index
      %c0_23 = arith.constant 0 : index
      %24 = vector.load %arg12[%c0_22, %c0_23] : memref<8x128xf32, #tpu.memory_space<vmem>>, vector<8x128xf32>
      %cst_24 = arith.constant dense<0.000000e+00> : vector<4x128xf32>
      %25 = tpu.matmul %23, %24, %cst_24 {dimension_numbers = #tpu.dot_dimension_numbers<[1], [0], [0], [1], [0, 0, 1, 1], [], []>} : vector<4x8xf32>, vector<8x128xf32>, vector<4x128xf32> -> vector<4x128xf32>
      %cst_25 = arith.constant dense<0.000000e+00> : vector<4xf32>
      %26 = vector.multi_reduction <add>, %25, %cst_25 [1] : vector<4x128xf32> to vector<4xf32>
      %27 = vector.shape_cast %26 : vector<4xf32> to vector<4x1xf32>
      %c0_26 = arith.constant 0 : index
      %c0_27 = arith.constant 0 : index
      %28 = vector.load %arg9[%c0_26, %c0_27] : memref<4x1xf32, #tpu.memory_space<vmem>>, vector<4x1xf32>
      %29 = arith.addf %27, %28 : vector<4x1xf32>
      %cst_28 = arith.constant 0.000000e+00 : f32
      %30 = vector.broadcast %cst_28 : f32 to vector<4x1xf32>
      %31 = arith.maximumf %29, %30 : vector<4x1xf32>
      %32 = vector.extract_strided_slice %31 {offsets = [0, 0], sizes = [2, 1], strides = [1, 1]} : vector<4x1xf32> to vector<2x1xf32>
      %cst_29 = arith.constant dense<0xFF800000> : vector<1xf32>
      %33 = vector.multi_reduction <maximumf>, %32, %cst_29 [0] : vector<2x1xf32> to vector<1xf32>
      %34 = vector.shape_cast %33 : vector<1xf32> to vector<1x1xf32>
      %35 = vector.broadcast %34 : vector<1x1xf32> to vector<2x1xf32>
      %36 = arith.subf %32, %35 : vector<2x1xf32>
      %37 = math.exp %36 : vector<2x1xf32>
      %cst_30 = arith.constant dense<0.000000e+00> : vector<1xf32>
      %38 = vector.multi_reduction <add>, %37, %cst_30 [0] : vector<2x1xf32> to vector<1xf32>
      %39 = vector.shape_cast %38 : vector<1xf32> to vector<1x1xf32>
      %40 = tpu.reciprocal %39 : vector<1x1xf32> -> vector<1x1xf32>
      %41 = vector.broadcast %40 : vector<1x1xf32> to vector<2x1xf32>
      %42 = arith.mulf %37, %41 : vector<2x1xf32>
      %c0_31 = arith.constant 0 : index
      %c0_32 = arith.constant 0 : index
      %c0_33 = arith.constant 0 : index
      %43 = vector.load %arg11[%c0_31, %c0_32, %c0_33] : memref<1x4x1xf32, #tpu.memory_space<vmem>>, vector<1x2x1xf32>
      %44 = vector.shape_cast %43 : vector<1x2x1xf32> to vector<2x1xf32>
      %45 = vector.shape_cast %42 : vector<2x1xf32> to vector<1x2x1xf32>
      tpu.vector_store %arg11[%c0_31, %c0_32, %c0_33], %45 {strides = array<i32>} : memref<1x4x1xf32, #tpu.memory_space<vmem>>, vector<1x2x1xf32>,
      %46 = vector.extract_strided_slice %31 {offsets = [2, 0], sizes = [2, 1], strides = [1, 1]} : vector<4x1xf32> to vector<2x1xf32>
      %cst_34 = arith.constant dense<0xFF800000> : vector<1xf32>
      %47 = vector.multi_reduction <maximumf>, %46, %cst_34 [0] : vector<2x1xf32> to vector<1xf32>
      %48 = vector.shape_cast %47 : vector<1xf32> to vector<1x1xf32>
      %49 = vector.broadcast %48 : vector<1x1xf32> to vector<2x1xf32>
      %50 = arith.subf %46, %49 : vector<2x1xf32>
      %51 = math.exp %50 : vector<2x1xf32>
      %cst_35 = arith.constant dense<0.000000e+00> : vector<1xf32>
      %52 = vector.multi_reduction <add>, %51, %cst_35 [0] : vector<2x1xf32> to vector<1xf32>
      %53 = vector.shape_cast %52 : vector<1xf32> to vector<1x1xf32>
      %54 = tpu.reciprocal %53 : vector<1x1xf32> -> vector<1x1xf32>
      %55 = vector.broadcast %54 : vector<1x1xf32> to vector<2x1xf32>
      %56 = arith.mulf %51, %55 : vector<2x1xf32>
      %c0_36 = arith.constant 0 : index
      %c2 = arith.constant 2 : index
      %c0_37 = arith.constant 0 : index
      %57 = vector.load %arg11[%c0_36, %c2, %c0_37] : memref<1x4x1xf32, #tpu.memory_space<vmem>>, vector<1x2x1xf32>
      %58 = vector.shape_cast %57 : vector<1x2x1xf32> to vector<2x1xf32>
      %59 = vector.shape_cast %56 : vector<2x1xf32> to vector<1x2x1xf32>
      tpu.vector_store %arg11[%c0_36, %c2, %c0_37], %59 {strides = array<i32>} : memref<1x4x1xf32, #tpu.memory_space<vmem>>, vector<1x2x1xf32>,
    } else {
    }
    return
  }
  func.func @transform_0(%arg0: i32, %arg1: i32) -> (i32, i32) {
    %c0_i32 = arith.constant 0 : i32
    return %arg0, %arg1 : i32, i32
  }
  func.func @transform_1(%arg0: i32, %arg1: i32) -> (i32, i32) {
    %c0_i32 = arith.constant 0 : i32
    return %arg0, %arg1 : i32, i32
  }
  func.func @transform_2(%arg0: i32, %arg1: i32) -> (i32, i32) {
    %c0_i32 = arith.constant 0 : i32
    %c0_i32_0 = arith.constant 0 : i32
    %c0_i32_1 = arith.constant 0 : i32
    return %c0_i32, %c0_i32_0 : i32, i32
  }
  func.func @transform_3(%arg0: i32, %arg1: i32) -> (i32, i32) {
    %c0_i32 = arith.constant 0 : i32
    %c0_i32_0 = arith.constant 0 : i32
    %c0_i32_1 = arith.constant 0 : i32
    return %c0_i32, %c0_i32_0 : i32, i32
  }
  func.func @transform_4(%arg0: i32, %arg1: i32) -> (i32, i32) {
    %c0_i32 = arith.constant 0 : i32
    %c0_i32_0 = arith.constant 0 : i32
    %c0_i32_1 = arith.constant 0 : i32
    return %c0_i32, %c0_i32_0 : i32, i32
  }
  func.func @transform_5(%arg0: i32, %arg1: i32) -> (i32, i32) {
    %c0_i32 = arith.constant 0 : i32
    %c0_i32_0 = arith.constant 0 : i32
    %c0_i32_1 = arith.constant 0 : i32
    return %c0_i32, %c0_i32_0 : i32, i32
  }
  func.func @transform_6(%arg0: i32, %arg1: i32) -> (i32, i32) {
    %c0_i32 = arith.constant 0 : i32
    %c0_i32_0 = arith.constant 0 : i32
    %c0_i32_1 = arith.constant 0 : i32
    return %c0_i32, %c0_i32_0 : i32, i32
  }
  func.func @transform_7(%arg0: i32, %arg1: i32) -> (i32, i32) {
    %c0_i32 = arith.constant 0 : i32
    %c0_i32_0 = arith.constant 0 : i32
    %c0_i32_1 = arith.constant 0 : i32
    return %c0_i32, %c0_i32_0 : i32, i32
  }
  func.func @transform_8(%arg0: i32, %arg1: i32) -> (i32, i32) {
    %c0_i32 = arith.constant 0 : i32
    return %arg0, %arg1 : i32, i32
  }
  func.func @transform_9(%arg0: i32, %arg1: i32) -> (i32, i32, i32) {
    %c0_i32 = arith.constant 0 : i32
    %c0_i32_0 = arith.constant 0 : i32
    %c0_i32_1 = arith.constant 0 : i32
    return %arg0, %c0_i32, %c0_i32_0 : i32, i32, i32
  }
}

</mosaic_0001>

<bundles_post_ra>
// kernel: tpu_custom_call.1
= control target key start
LH: loop header
LB: loop body
LE: loop exit
PB: predicated region body
PF: predicated region fallthrough
CT: control target
= control target key end

     0   :  { %s1412_s0 = inlined_call_operand.vmem [shape: f32[8,256], index: 0, kind: input, shape index: {}]   ;;  %s1413_s1 = inlined_call_operand.hbm [shape: f32[8,256], index: 1, kind: input, shape index: {}]   ;;  %s1414_s2 = inlined_call_operand.vmem [shape: f32[8,8], index: 2, kind: input, shape index: {}]   ;;  %s1415_s3 = inlined_call_operand.hbm [shape: f32[8,8], index: 3, kind: input, shape index: {}]   ;;  %s1416_s4 = inlined_call_operand.vmem [shape: f32[8,1], index: 4, kind: input, shape index: {}]   ;;  %s1417_s5 = inlined_call_operand.vmem [shape: f32[8,1], index: 5, kind: input, shape index: {}]   ;;  %s1418_s6 = inlined_call_operand.vmem [shape: f32[4,8], index: 6, kind: input, shape index: {}]   ;;  %s1419_s7 = inlined_call_operand.vmem [shape: f32[4,1], index: 7, kind: input, shape index: {}]   ;;  %s1420_s8 = inlined_call_operand.hbm [shape: f32[8,256], index: 8, kind: output, shape index: {0}]   ;;  %s1421_s9 = inlined_call_operand.vmem [shape: f32[1,4,1], index: 9, kind: output, shape index: {1}]  }
   0x1   :  { %1427 = sst [smem:[#allocation16_spill]] %s1415_s3 }
   0x2   :  { %15 = vsyncpa [#allocation4], 0 }
   0x3   :  { %17 = vsyncpa [#allocation4 + $0x1], 0 }
   0x4   :  { %18 = vsyncpa [#allocation7], 0 }
   0x5   :  { %19 = vsyncpa [#allocation5], 0 }
   0x6   :  { %21 = vsyncpa [#allocation5 + $0x1], 0  ;;  %s1210_s30 = smov 0   ;;  %s1212_s10 = smov 0  }
   0x7   :  { %s1214_s11 = smov 0   ;;  %s1216_s12 = smov 0  }
   0x8   :  { %s1218_s13 = smov 0   ;;  %s1220_s14 = smov 0  }
   0x9 LB: > { %1428 = sst [smem:[#allocation12_spill]] %s1129_s30  ;;  %s880_s15 = sadd.s32 4294967295, %s1149_s14   ;;  %s1149_s14 = sphi %s1220_s14, %s27_s14   ;;  %s1145_s13 = sphi %s1218_s13, %s1447_s13   ;;  %s1141_s12 = sphi %s1216_s12, %s1446_s12   ;;  %s1137_s11 = sphi %s1214_s11, %s1450_s11   ;;  %s1133_s10 = sphi %s1212_s10, %s1449_s10   ;;  %s1129_s30 = sphi %s1210_s30, %s1448_s30  }
   0xa   : > { %1429 = sst [smem:[#allocation13_spill]] %s1145_s13  ;;  %s881_s16 = sadd.s32 4294967294, %s1149_s14  }
   0xb   : > { %p89_p0 = scmp.ne.s32.totalorder %s1133_s10, %s1129_s30  ;;  %p1244_p1 = scmp.eq.s32.totalorder %s880_s15, 0 }
   0xc   : > { %p1248_p2 = scmp.eq.s32.totalorder %s880_s15, 1  ;;  %p247_p3 = scmp.eq.s32.totalorder %s881_s16, 1 }
   0xd   : > { %p1254_p4 = por %p1244_p1, %p89_p0  ;;  %p882_p5 = scmp.ge.s32.totalorder %s1149_s14, 1 }
   0xe   : > { %p1259_p6 = por %p247_p3, %p89_p0  ;;  %p280_p7 = scmp.lt.s32.totalorder %s1149_s14, 3 }
   0xf   : > { %s1432_s19 = scalar_select %p1254_p4, 1, 0 }
  0x10   : > { %s1433_s20 = scalar_select %p1259_p6, 1, 0 }
  0x11   : > { %p1264_p8 = pnand %p882_p5, %p280_p7  ;;  %s1151_s22 = smov [#allocation6]  }
  0x12   : > { %1434 = sst [smem:[#allocation14_spill]] %s1433_s20  ;;  %s296_s23 = sshll.u32 %s1151_s22, 4  ;;  %s297_s23 = int_to_ptr.vmem [resolvable:$true] %s296_s23 }
  0x13   : > { %p931_p10 = pneg %p1264_p8  ;;  %s36_s25 = sadd.s32 1, %s1145_s13 }
  0x14   : > { %s76_s26 = sadd.s32 1, %s1137_s11  ;;  %p37_p12 = scmp.ge.s32.totalorder %s36_s25, 2 }
  0x15   : > { %p1273_p11 = pnand %p931_p10, %p1244_p1  ;;  %s1022_s27 = scalar_lea.vmem %s297_s23, 128 }
  0x16   : > { %p1023_p0 = scmp.ne.s32.totalorder %s297_s23, %s1022_s27  ;;  %p1030_p7 = scmp.lt.s32.totalorder %s297_s23, %s297_s23 }
  0x17   : > { %p1013_p13 = pneg %p1273_p11  ;;  %p1031_p6 = scmp.lt.s32.totalorder %s1022_s27, %s1022_s27 }
  0x19   : > { %p1025_p3 = pnand %p1023_p0, %p1013_p13  ;;  %p1032_p9 = por %p1031_p6, %p1030_p7 }
  0x1b   : > { %p1026_p5 = pneg %p1025_p3 }
  0x1d   : > { %p1033_p4 = pnand %p1032_p9, %p1026_p5 }
  0x1f   : > { %1036 = shalt.err (!%p1033_p4)
}
  0x20   : > { %s1437_s3 = sld [smem:[#allocation16_spill]]  ;;  %s1452_s25 = smov (%p37_p12, %s36_s25), 0 }
  0x21   : > { %1438 = sst [smem:[#allocation15_spill]] %s1452_s25  ;;  %p83_p6 = scmp.ne.s32.totalorder %s1137_s11, %s1133_s10 }
  0x22   : > { %p84_p4 = scmp.eq.s32.totalorder %s1149_s14, 0  ;;  %s72_s15 = ssub.s32 %s1145_s13, %s1452_s25 }
  0x23   : > { %p944_p9 = scmp.lt.s32.totalorder %s1149_s14, 2  ;;  %p74_p10 = scmp.eq.s32.totalorder %s72_s15, 0 }
  0x24   : > { %p85_p13 = por %p84_p4, %p83_p6  ;;  %p1296_p0 = por %p1248_p2, %p83_p6 }
  0x25   : > { %s330_s22 = sand.u32 1, %s1137_s11   ;;  %s886_s28 = sshll.u32 %s1145_s13, 7 }
  0x26   : > { %934 = dma.hbm_to_vmem [thread:$0]  (!%p1273_p11), %s1437_s3, 128, %s297_s23, [#allocation7]  }
  0x27   : > { %s1302_s24 = scalar_select %p74_p10, %s1137_s11, %s76_s26  }
  0x28   : > { %s885_s27 = sshll.u32 %s330_s22, 3  ;;  %s341_s3 = scalar_lea.hbm %s1413_s1, %s886_s28 }
  0x29   : > { %s334_s20 = scalar_lea.vmem [#allocation3], %s885_s27  ;;  %p1308_p11 = pnand %p944_p9, %p85_p13 }
  0x2a   : > { %s343_s30 = sshll.u32 %s334_s20, 4  ;;  %s331_s18 = scalar_lea.sflag [#allocation4], %s330_s22  ;;  %s344_s30 = int_to_ptr.vmem [resolvable:$true] %s343_s30 }
  0x2b   : > { %p1039_p2 = pneg %p1308_p11  ;;  %s1050_s25 = scalar_lea.vmem %s344_s30, 128 }
  0x2c   : > { %p1051_p12 = scmp.ne.s32.totalorder %s344_s30, %s1050_s25  ;;  %s1152_s26 = smov [#allocation3]  }
  0x2d   : > { %s1055_s13 = sshll.u32 %s1152_s26, 4  ;;  %s1056_s13 = int_to_ptr.vmem [resolvable:$false] %s1055_s13 }
  0x2e   : > { %p1053_p3 = pnand %p1051_p12, %p1039_p2  ;;  %s1057_s23 = scalar_lea.vmem %s1056_s13, 256 }
  0x2f   : > { %p1058_p7 = scmp.lt.s32.totalorder %s344_s30, %s1056_s13  ;;  %p1059_p6 = scmp.lt.s32.totalorder %s1057_s23, %s1050_s25 }
  0x30   : > { %p1054_p5 = pneg %p1053_p3 }
  0x31   : > { %p1060_p4 = por %p1059_p6, %p1058_p7 }
  0x33   : > { %p1061_p10 = pnand %p1060_p4, %p1054_p5 }
  0x35   : > { %1064 = shalt.err (!%p1061_p10)
}
  0x36   : > { %938 = dma.hbm_to_vmem [thread:$0]  (!%p1308_p11), %s341_s3, 128, %s344_s30, %s331_s18  }
  0x37   : > { %352 = sbr.rel (%p1264_p8) target bundleno = 710 (0x2c6), region = 52  ;;  %s1319_s20 = sand.u32 (!%p1264_p8), 1, %s1133_s10  }
  0x38   : > { %s888_s22 = sshll.u32 (!%p1264_p8), %s1319_s20, 3  ;;  %s355_s27 = scalar_lea.sflag (!%p1264_p8), [#allocation4], %s1319_s20 }
  0x39   : > { %s358_s28 = scalar_lea.vmem (!%p1264_p8), [#allocation3], %s888_s22  ;;  %p1441_p9 = scmp.ne.s32.totalorder (!%p1264_p8), %s1432_s19, 0 }
  0x3c   : > { %1116 = dma.done.wait (%p1441_p9), %s355_s27, 128  }
  0x3d   : > { %1118 = vsyncadd (%p1441_p9), %s355_s27, 4294967168 }
  0x3e   : > { %1120 = dma.done.wait (%p1244_p1), [#allocation7], 128  }
  0x3f   : > { %1122 = vsyncadd (%p1244_p1), [#allocation7], 4294967168  ;;  %p411_p8 = scmp.lt.s32.totalorder %s1141_s12, 1  ;;  %s1336_s29 = scalar_lea.vmem [#allocation8], %s888_s22 }
  0x40   : > { %p892_p13 = scmp.ne.s32.totalorder %s1141_s12, 0 }
  0x41   : > { %s412_s3 = scalar_select %p411_p8, %s1141_s12, 1 }
  0x42   : > { %424 = sbr.rel (%p892_p13) target bundleno = 73 (0x49), region = 64 }
  0x43   : > { %s891_s30 = sshll.u32 %s412_s3, 3 }
  0x44   : > { %s416_s25 = scalar_lea.vmem %s1412_s0, %s891_s30 }
  0x47   : > { %v1153_v0 = vmov 0.0  }
  0x48   : > { %425 = vst [vmem:[#allocation2] sm:$0xff] %v1153_v0 }
  0x49 PF: > { %v429_v1 = vld [vmem:[%s358_s28] sm:$0xff]  ;;  %v427_v2 = vld [vmem:[%s416_s25] sm:$0xff]  ;;  %v1154_v3 = vmov 0.0   ;;  %v428_v4 = vld [vmem:[#allocation6] sm:$0xff]  ;;  %vm430_vm0 = vcmask 64512   ;;  %vm1155_vm1 = vmmov 0  }
  0x4a   : > { %908 = vmatprep.subr.mxu0 %v1154_v3  ;;  %913 = vmatprep.subr.mxu1 %v1154_v3  ;;  %v426_v5 = vld [vmem:[%s1414_s2] sm:$0xff]  ;;  %v1156_v7 = vmov 0   ;;  %p895_p1 = scmp.ne.s32.totalorder %s1141_s12, 1 }
  0x4b   : > { %909 = vmatpush3.msra.mxu0 %v429_v1  ;;  %910 = vmatprep.mubr.msk.f32.mxu0 %vm1155_vm1, %v1154_v3  ;;  %v577_v6 = vld [vmem:[%s1416_s4] sm:$0xff] }
  0x4c   : > { %914 = vmatpush3.msra.mxu1 %v427_v2  ;;  %915 = vmatprep.mubr.msk.f32.mxu1 %vm1155_vm1, %v1154_v3  ;;  %v584_v8 = vld [vmem:[%s1417_s5] sm:$0xff] }
  0x4d   : > { %911 = vmatmul.mubr.msk.f32.vlgmr.msra.gmra.mxu0 %vm430_vm0, %v428_v4  ;;  %916 = vmatmul.mubr.msk.f32.vlgmr.msra.gmra.mxu1 %vm430_vm0, %v426_v5 }
  0x4e   : > { %1002 = vset.pattern.permute.xlu0 %v1156_v7 }
  0x4f   : > { %580 = vperm.xlu0 %1002, %v577_v6   ;;  %v592_v17 = vld [vmem:[#allocation2] sm:$0xff] }
  0x53   : > { %587 = vperm.xlu0 %1002, %v584_v8  }
  0xca   : > { %v581_v9 = vpop.permute.xlu0 %580 }
  0xce   : > { %v588_v16 = vpop.permute.xlu0 %587 }
 0x10d   : > { %v500_v10 = vpop.f32.mrf.mxu0  ;;  %v573_v11 = vpop.f32.mrf.mxu1 }
 0x10e   : > { %v574_v12 = vadd.f32 %v573_v11, %v500_v10 }
 0x10f   : > { %v912_v13 = vpop.f32.mrf.mxu0  ;;  %v917_v14 = vpop.f32.mrf.mxu1 }
 0x110   : > { %v583_v15 = vmul.f32 %v581_v9, %v574_v12 }
 0x112   : > { %v590_v18 = vadd.f32 %v588_v16, %v583_v15  ;;  %598 = sbr.rel (%p895_p1) target bundleno = 687 (0x2af), region = 68 }
 0x114   : > { %591 = vst [vmem:[%s1336_s29] sm:$0xff] %v590_v18  ;;  %v593_v19 = vadd.f32 %v592_v17, %v590_v18 }
 0x116   : > { %594 = vst [vmem:[#allocation2] sm:$0xff] %v593_v19 }
 0x117   : > { %v599_v21 = vld [vmem:[%s1418_s6] sm:$0xf]  ;;  %v1157_v22 = vmov 0.0   ;;  %vm1158_vm2 = vmmov 0   ;;  %vm674_vm3 = vcmask 1043456   ;;  %vm681_vm4 = vcmask 1024  }
 0x118   : > { %918 = vmatprep.subr.mxu0 %v1157_v22  ;;  %920 = vmatprep.mubr.msk.f32.mxu0 %vm1158_vm2, %v1157_v22  ;;  %v678_v26 = vld [vmem:[%s1419_s7] sm:$0xf]  ;;  %vm702_vm5 = vcmask 3074  }
 0x11d   : > { %v600_v20 = vld [vmem:[#allocation2] sm:$0xff] }
 0x11e   : > { %919 = vmatpush3.msra.mxu0 %v600_v20 }
 0x11f   : > { %921 = vmatmul.mubr.msk.f32.vlgmr.msra.gmra.mxu0 %vm430_vm0, %v599_v21 }
 0x1df   : > { %v670_v23 = vpop.f32.mrf.mxu0 }
 0x1e0   : > { %v675_v24 = vsel %vm674_vm3, %v670_v23, 0.0 }
 0x1e1   : > { %v922_v25 = vpop.f32.mrf.mxu0  ;;  %676 = vadd.xlane.f32.xlu0 %v675_v24 }
 0x26a   : > { %v677_v27 = vpop.xlane.xlu0 %676 }
 0x26b   : > { %v679_v28 = vadd.f32 %v678_v26, %v677_v27 }
 0x26d   : > { %v680_v29 = vmax.f32 %v679_v28, 0.0 }
 0x26f   : > { %v682_v30 = vsel %vm681_vm4, %v680_v29, -inf  ;;  %v703_v31 = vsel %vm702_vm5, %v680_v29, -inf }
 0x270   : > { %v683_v32 = vrot.slane %v682_v30, 4  ;;  %v704_v33 = vrot.slane %v703_v31, 4 }
 0x272   : > { %v684_v34 = vmax.f32 %v682_v30, %v683_v32  ;;  %v705_v35 = vmax.f32 %v703_v31, %v704_v33 }
 0x274   : > { %v685_v36 = vrot.slane %v684_v34, 2  ;;  %v706_v37 = vrot.slane %v705_v35, 2 }
 0x276   : > { %v686_v38 = vmax.f32 %v684_v34, %v685_v36  ;;  %v707_v39 = vmax.f32 %v705_v35, %v706_v37 }
 0x278   : > { %v687_v40 = vrot.slane %v686_v38, 1  ;;  %v708_v41 = vrot.slane %v707_v39, 1 }
 0x27a   : > { %v688_v42 = vmax.f32 %v686_v38, %v687_v40  ;;  %v709_v43 = vmax.f32 %v707_v39, %v708_v41 }
 0x27c   : > { %v689_v44 = vsub.f32 %v680_v29, %v688_v42  ;;  %v710_v45 = vsub.f32 %v680_v29, %v709_v43 }
 0x27e   : > { %v690_v46 = vmul.f32 1.442695, %v689_v44  ;;  %v711_v47 = vmul.f32 1.442695, %v710_v45 }
 0x280   : > { %1003 = vpow2.f32 %v690_v46 }
 0x281   : > { %1005 = vpow2.f32 %v711_v47 }
 0x28d   : > { %v1004_v48 = vpop.eup %1003 }
 0x28e   : > { %v1006_v49 = vpop.eup %1005  ;;  %v692_v50 = vsel %vm681_vm4, %v1004_v48, 0.0 }
 0x28f   : > { %v693_v51 = vrot.slane %v692_v50, 4  ;;  %v714_v52 = vrot.slane %v1006_v49, 2 }
 0x291   : > { %v694_v53 = vadd.f32 %v693_v51, %v692_v50  ;;  %v716_v54 = vsel %vm681_vm4, %v714_v52, 0.0 }
 0x292   : > { %v717_v55 = vrot.slane %v716_v54, 4 }
 0x293   : > { %v695_v56 = vrot.slane %v694_v53, 2 }
 0x294   : > { %v718_v57 = vadd.f32 %v717_v55, %v716_v54 }
 0x295   : > { %v696_v58 = vadd.f32 %v695_v56, %v694_v53 }
 0x296   : > { %v719_v59 = vrot.slane %v718_v57, 2 }
 0x297   : > { %v697_v60 = vrot.slane %v696_v58, 1 }
 0x298   : > { %v720_v61 = vadd.f32 %v719_v59, %v718_v57 }
 0x299   : > { %v698_v62 = vadd.f32 %v697_v60, %v696_v58 }
 0x29a   : > { %v721_v63 = vrot.slane %v720_v61, 1 }
 0x29b   : > { %1007 = vrcp.f32 %v698_v62 }
 0x29c   : > { %v722_v0 = vadd.f32 %v721_v63, %v720_v61 }
 0x29e   : > { %1009 = vrcp.f32 %v722_v0 }
 0x2a8   : > { %v1008_v1 = vpop.eup %1007 }
 0x2a9   : > { %v700_v2 = vmul.f32 %v1008_v1, %v1004_v48 }
 0x2ab   : > { %v1010_v3 = vpop.eup %1009  ;;  %701 = vst.msk [vmem:[%s1421_s9] sm:$0x3] %vm681_vm4, %v700_v2 }
 0x2ac   : > { %v724_v4 = vmul.f32 %v1010_v3, %v1006_v49 }
 0x2ae   : > { %725 = vst.msk [vmem:[%s1421_s9] sm:$0xc] %vm702_vm5, %v724_v4 }
 0x2af PF: > { %s898_s17 = sshll.u32 %s1141_s12, 7  ;;  %s746_s26 = sshll.u32 %s1336_s29, 4  ;;  %s747_s26 = int_to_ptr.vmem [resolvable:$true] %s746_s26 }
 0x2b0   : > { %s744_s18 = scalar_lea.hbm %s1420_s8, %s898_s17  ;;  %s727_s23 = scalar_lea.sflag [#allocation5], %s1319_s20 }
 0x2b1   : > { %s1065_s22 = scalar_lea.vmem %s747_s26, 128  ;;  %s1159_s27 = smov [#allocation8]  }
 0x2b2   : > { %p1066_p11 = scmp.ne.s32.totalorder %s747_s26, %s1065_s22  ;;  %s1069_s28 = sshll.u32 %s1159_s27, 4  ;;  %s1070_s28 = int_to_ptr.vmem [resolvable:$false] %s1069_s28 }
 0x2b3   : > { %s1071_s3 = scalar_lea.vmem %s1070_s28, 256  ;;  %p1072_p3 = scmp.lt.s32.totalorder %s747_s26, %s1070_s28 }
 0x2b4   : > { %p1067_p2 = pnand %p1066_p11, %p1296_p0  ;;  %p1073_p5 = scmp.lt.s32.totalorder %s1071_s3, %s1065_s22 }
 0x2b6   : > { %p1068_p12 = pneg %p1067_p2  ;;  %p1074_p7 = por %p1073_p5, %p1072_p3 }
 0x2b8   : > { %p1075_p6 = pnand %p1074_p7, %p1068_p12 }
 0x2ba   : > { %1078 = shalt.err (!%p1075_p6)
}
 0x2bb   : > { %s1079_s12 = scalar_lea.hbm %s744_s18, 128  ;;  %s1083_s30 = scalar_lea.hbm %s1420_s8, 256 }
 0x2bc   : > { %p1080_p4 = scmp.ne.s32.totalorder %s744_s18, %s1079_s12  ;;  %p1084_p8 = scmp.lt.s32.totalorder %s744_s18, %s1420_s8 }
 0x2bd   : > { %p1085_p13 = scmp.lt.s32.totalorder %s1083_s30, %s1079_s12 }
 0x2be   : > { %p1081_p10 = pnand %p1080_p4, %p1296_p0 }
 0x2bf   : > { %p1086_p1 = por %p1085_p13, %p1084_p8 }
 0x2c0   : > { %p1082_p9 = pneg %p1081_p10 }
 0x2c2   : > { %p1087_p11 = pnand %p1086_p1, %p1082_p9 }
 0x2c4   : > { %1090 = shalt.err (!%p1087_p11)
}
 0x2c5   : > { %929 = dma.vmem_to_hbm [thread:$0]  (%p1296_p0), %s747_s26, 128, %s744_s18, %s727_s23  }
 0x2c6 PF: > { %s1442_s25 = sld [smem:[#allocation12_spill]]  ;;  %p1445_p12 = scmp.ge.s32.totalorder %s1149_s14, 2 }
 0x2c7   : > { %s1443_s17 = sld [smem:[#allocation14_spill]] }
 0x2cc   : > { %s768_s19 = sand.u32 1, %s1442_s25  }
 0x2cd   : > { %p1444_p2 = scmp.ne.s32.totalorder %s1443_s17, 0  ;;  %s769_s15 = scalar_lea.sflag [#allocation5], %s768_s19 }
 0x2cf   : > { %p940_p3 = pnand %p1445_p12, %p1444_p2 }
 0x2d1   : > { %p941_p5 = pneg %p940_p3 }
 0x2d3   : > { %1124 = dma.done.wait (%p941_p5), %s769_s15, 128  }
 0x2d4   : > { %1126 = vsyncadd (%p941_p5), %s769_s15, 4294967168  ;;  %s27_s14 = sadd.s32 1, %s1149_s14   ;;  %s1446_s12 = sld [smem:[#allocation13_spill]] }
 0x2d5   : > { %p24_p7 = scmp.ge.s32.totalorder %s27_s14, 4   ;;  %s1447_s13 = sld [smem:[#allocation15_spill]] }
 0x2d6   : > { %s1448_s30 = smov %s1133_s10  ;;  %s1449_s10 = smov %s1137_s11 }
 0x2d7   : > { %s1450_s11 = smov %s1302_s24  ;;  %26 = sbr.rel (!%p24_p7) target bundleno = 9 (0x9), region = 124 }
 0x2dc   :  { %774 = vsyncpa [#allocation4], 1 }
 0x2dd   :  { %776 = vsyncpa [#allocation4 + $0x1], 1 }
 0x2de   :  { %777 = vsyncpa [#allocation7], 1 }
 0x2df   :  { %778 = vsyncpa [#allocation5], 1 }
 0x2e0   :  { %780 = vsyncpa [#allocation5 + $0x1], 1 }

</bundles_post_ra>
